<compile_context>
chip_gen: v7x
topology: tpu7x:2x2x1
jax: 0.10.0
libtpu: 0.0.40
codegen_flags: <defaults>
</compile_context>

<pallas_src>
import jax
import jax.numpy as jnp
import numpy as np
from jax.experimental import pallas as pl
from jax.experimental.pallas import tpu as pltpu


# ----------------------------- Pallas kernel ------------------------------

def _fused_gcn_kernel(a_ref, x_ref, w1_ref, b1_ref, w2_ref, b2_ref, o_ref):
    """Entire 2-layer GCN forward on one (node x node) block.

    a_ref : (N, N)  bf16   symmetrically normalized adjacency (with self loops)
    x_ref : (N, Fin) bf16  node features
    w1_ref: (Fin, H) bf16, b1_ref: (1, H) f32
    w2_ref: (H, Cp)  bf16, b2_ref: (1, Cp) f32   (class dim padded to Cp lanes)
    o_ref : (N, Cp)  f32   log-softmax output (padded classes hold ~-1e30)
    """
    a = a_ref[...]

    # ---- conv1: (X @ W1) -> aggregate -> + b1 -> ReLU (f32 accumulation) ----
    h0 = jnp.dot(x_ref[...], w1_ref[...], preferred_element_type=jnp.float32)
    h1 = jnp.dot(a, h0.astype(jnp.bfloat16), preferred_element_type=jnp.float32)
    h1 = jnp.maximum(h1 + b1_ref[...], 0.0)

    # TODO(synk): F.dropout(training=self.training) is stochastic; implemented as
    # identity (eval-mode semantics) here.

    # ---- conv2: (H1 @ W2) -> aggregate -> + b2 ----
    h2 = jnp.dot(h1.astype(jnp.bfloat16), w2_ref[...],
                 preferred_element_type=jnp.float32)
    logits = jnp.dot(a, h2.astype(jnp.bfloat16),
                     preferred_element_type=jnp.float32) + b2_ref[...]

    # ---- log_softmax over the (padded) class lanes, in f32 ----
    m = jnp.max(logits, axis=-1, keepdims=True)
    s = logits - m
    o_ref[...] = s - jnp.log(jnp.sum(jnp.exp(s), axis=-1, keepdims=True))


# ------------------------------- wrapper -----------------------------------

LANE = 128  # pad the output class dim to a lane-dense width


def gcn_forward(x, a_hat, params):
    n, f_in = x.shape
    hidden = params["w1"].shape[1]
    c = params["w2"].shape[1]
    cp = max(LANE, c)

    # bf16 MXU operands (f32 accumulation inside the kernel).
    a_bf = a_hat.astype(jnp.bfloat16)
    x_bf = x.astype(jnp.bfloat16)
    w1_bf = params["w1"].astype(jnp.bfloat16)

    # Pad classes to a lane-dense width: extra weight columns are 0, extra bias
    # entries are -1e30 so log_softmax ignores them; sliced off after the call.
    w2_p = jnp.zeros((hidden, cp), jnp.bfloat16).at[:, :c].set(
        params["w2"].astype(jnp.bfloat16))
    b2_p = jnp.full((1, cp), -1e30, jnp.float32).at[:, :c].set(params["b2"])
    b1 = params["b1"].astype(jnp.float32)

    flops = (2 * n * f_in * hidden + 2 * n * n * hidden
             + 2 * n * hidden * c + 2 * n * n * c)
    transcendentals = n * (cp + 1)                     # exp per lane + log
    bytes_accessed = (a_bf.size * 2 + x_bf.size * 2 + w1_bf.size * 2
                      + w2_p.size * 2 + b1.size * 4 + b2_p.size * 4
                      + n * cp * 4)

    out_padded = pl.pallas_call(
        _fused_gcn_kernel,
        out_shape=jax.ShapeDtypeStruct((n, cp), jnp.float32),
        grid=(1,),
        in_specs=[
            pl.BlockSpec((n, n), lambda i: (0, 0)),        # A_hat
            pl.BlockSpec((n, f_in), lambda i: (0, 0)),     # X
            pl.BlockSpec((f_in, hidden), lambda i: (0, 0)),  # W1
            pl.BlockSpec((1, hidden), lambda i: (0, 0)),   # b1
            pl.BlockSpec((hidden, cp), lambda i: (0, 0)),  # W2 (padded)
            pl.BlockSpec((1, cp), lambda i: (0, 0)),       # b2 (padded)
        ],
        out_specs=pl.BlockSpec((n, cp), lambda i: (0, 0)),
        compiler_params=pltpu.CompilerParams(
            dimension_semantics=("arbitrary",)),
        cost_estimate=pl.CostEstimate(
            flops=flops,
            transcendentals=transcendentals,
            bytes_accessed=bytes_accessed),
    )(a_bf, x_bf, w1_bf, b1, w2_p, b2_p)

    return out_padded[:, :c]


gcn_forward_jit = jax.jit(gcn_forward)


# ------------------------------- glue (JAX) --------------------------------

def build_a_hat(edge_index, num_nodes):
    """Dense D^{-1/2} (A + I) D^{-1/2}, matching PyG GCNConv normalization."""
    src, dst = edge_index[0], edge_index[1]
    loop = jnp.arange(num_nodes)
    src = jnp.concatenate([src, loop])
    dst = jnp.concatenate([dst, loop])
    a = jnp.zeros((num_nodes, num_nodes), jnp.float32).at[dst, src].add(1.0)
    deg = a.sum(axis=1)                      # in-degree at target (incl. self-loop)
    dis = jax.lax.rsqrt(deg)
    return dis[:, None] * a * dis[None, :]


def init_params(key, f_in, hidden, num_classes):
    k1, k2 = jax.random.split(key)

    def glorot(k, fan_in, fan_out):
        lim = jnp.sqrt(6.0 / (fan_in + fan_out))
        return jax.random.uniform(k, (fan_in, fan_out), jnp.float32, -lim, lim)

    return {
        "w1": glorot(k1, f_in, hidden),
        "b1": jnp.zeros((1, hidden), jnp.float32),
        "w2": glorot(k2, hidden, num_classes),
        "b2": jnp.zeros((1, num_classes), jnp.float32),
    }


def gcn_reference(x, a_hat, params):
    h = a_hat @ (x @ params["w1"]) + params["b1"]
    h = jnp.maximum(h, 0.0)
    logits = a_hat @ (h @ params["w2"]) + params["b2"]
    return jax.nn.log_softmax(logits, axis=1)


# --------------------------------- main ------------------------------------

if __name__ == "__main__":
    N, F_IN, HIDDEN, NUM_CLASSES, E = 128, 64, 16, 8, 512

    key = jax.random.PRNGKey(0)
    k_x, k_src, k_dst, k_params = jax.random.split(key, 4)

    x = jax.random.normal(k_x, (N, F_IN), jnp.float32)
    src = jax.random.randint(k_src, (E,), 0, N, jnp.int32)
    dst = jax.random.randint(k_dst, (E,), 0, N, jnp.int32)
    edge_index = jnp.stack([src, dst])          # (2, E), like data.edge_index

    a_hat = build_a_hat(edge_index, N)
    params = init_params(k_params, F_IN, HIDDEN, NUM_CLASSES)

    out = gcn_forward_jit(x, a_hat, params)
    out = jax.block_until_ready(out)

    ref = gcn_reference(x, a_hat, params)
    # bf16 MXU operands (f32 accumulation) -> loosen tolerance vs. f32 reference.
    np.testing.assert_allclose(np.asarray(out), np.asarray(ref),
                               rtol=2e-2, atol=5e-2)

    print("KERNEL_OK")
</pallas_src>

<mosaic_0001>
module attributes {stable_mosaic.version = 11 : i64} {
  func.func @_fused_gcn_kernel(%arg0: i32, %arg1: memref<128x128xbf16, #tpu.memory_space<vmem>>, %arg2: memref<128x64xbf16, #tpu.memory_space<vmem>>, %arg3: memref<64x16xbf16, #tpu.memory_space<vmem>>, %arg4: memref<1x16xf32, #tpu.memory_space<vmem>>, %arg5: memref<16x128xbf16, #tpu.memory_space<vmem>>, %arg6: memref<1x128xf32, #tpu.memory_space<vmem>>, %arg7: memref<128x128xf32, #tpu.memory_space<vmem>>) attributes {dimension_semantics = [#tpu.dimension_semantics<arbitrary>], iteration_bounds = array<i64: 1>, scalar_prefetch = 0 : i64, scratch_operands = 0 : i64, tpu.core_type = #tpu.core_type<tc>, window_params = [{pipeline_mode = #tpu.pipeline_mode<synchronous>, transform_indices = @transform_0, window_bounds = array<i64: 128, 128>}, {pipeline_mode = #tpu.pipeline_mode<synchronous>, transform_indices = @transform_1, window_bounds = array<i64: 128, 64>}, {pipeline_mode = #tpu.pipeline_mode<synchronous>, transform_indices = @transform_2, window_bounds = array<i64: 64, 16>}, {pipeline_mode = #tpu.pipeline_mode<synchronous>, transform_indices = @transform_3, window_bounds = array<i64: 1, 16>}, {pipeline_mode = #tpu.pipeline_mode<synchronous>, transform_indices = @transform_4, window_bounds = array<i64: 16, 128>}, {pipeline_mode = #tpu.pipeline_mode<synchronous>, transform_indices = @transform_5, window_bounds = array<i64: 1, 128>}, {pipeline_mode = #tpu.pipeline_mode<synchronous>, transform_indices = @transform_6, window_bounds = array<i64: 128, 128>}]} {
    %c0 = arith.constant 0 : index
    %c0_0 = arith.constant 0 : index
    %0 = vector.load %arg1[%c0, %c0_0] : memref<128x128xbf16, #tpu.memory_space<vmem>>, vector<128x128xbf16>
    %c0_1 = arith.constant 0 : index
    %c0_2 = arith.constant 0 : index
    %1 = vector.load %arg2[%c0_1, %c0_2] : memref<128x64xbf16, #tpu.memory_space<vmem>>, vector<128x64xbf16>
    %c0_3 = arith.constant 0 : index
    %c0_4 = arith.constant 0 : index
    %2 = vector.load %arg3[%c0_3, %c0_4] : memref<64x16xbf16, #tpu.memory_space<vmem>>, vector<64x16xbf16>
    %cst = arith.constant dense<0.000000e+00> : vector<128x16xf32>
    %3 = tpu.matmul %1, %2, %cst {dimension_numbers = #tpu.dot_dimension_numbers<[1], [0], [0], [1], [0, 0, 1, 1], [], []>} : vector<128x64xbf16>, vector<64x16xbf16>, vector<128x16xf32> -> vector<128x16xf32>
    %4 = arith.truncf %3 : vector<128x16xf32> to vector<128x16xbf16>
    %cst_5 = arith.constant dense<0.000000e+00> : vector<128x16xf32>
    %5 = tpu.matmul %0, %4, %cst_5 {dimension_numbers = #tpu.dot_dimension_numbers<[1], [0], [0], [1], [0, 0, 1, 1], [], []>} : vector<128x128xbf16>, vector<128x16xbf16>, vector<128x16xf32> -> vector<128x16xf32>
    %c0_6 = arith.constant 0 : index
    %c0_7 = arith.constant 0 : index
    %6 = vector.load %arg4[%c0_6, %c0_7] : memref<1x16xf32, #tpu.memory_space<vmem>>, vector<1x16xf32>
    %7 = vector.broadcast %6 : vector<1x16xf32> to vector<128x16xf32>
    %8 = arith.addf %5, %7 : vector<128x16xf32>
    %cst_8 = arith.constant 0.000000e+00 : f32
    %9 = vector.broadcast %cst_8 : f32 to vector<128x16xf32>
    %10 = arith.maximumf %8, %9 : vector<128x16xf32>
    %11 = arith.truncf %10 : vector<128x16xf32> to vector<128x16xbf16>
    %c0_9 = arith.constant 0 : index
    %c0_10 = arith.constant 0 : index
    %12 = vector.load %arg5[%c0_9, %c0_10] : memref<16x128xbf16, #tpu.memory_space<vmem>>, vector<16x128xbf16>
    %cst_11 = arith.constant dense<0.000000e+00> : vector<128x128xf32>
    %13 = tpu.matmul %11, %12, %cst_11 {dimension_numbers = #tpu.dot_dimension_numbers<[1], [0], [0], [1], [0, 0, 1, 1], [], []>} : vector<128x16xbf16>, vector<16x128xbf16>, vector<128x128xf32> -> vector<128x128xf32>
    %14 = arith.truncf %13 : vector<128x128xf32> to vector<128x128xbf16>
    %cst_12 = arith.constant dense<0.000000e+00> : vector<128x128xf32>
    %15 = tpu.matmul %0, %14, %cst_12 {dimension_numbers = #tpu.dot_dimension_numbers<[1], [0], [0], [1], [0, 0, 1, 1], [], []>} : vector<128x128xbf16>, vector<128x128xbf16>, vector<128x128xf32> -> vector<128x128xf32>
    %c0_13 = arith.constant 0 : index
    %c0_14 = arith.constant 0 : index
    %16 = vector.load %arg6[%c0_13, %c0_14] : memref<1x128xf32, #tpu.memory_space<vmem>>, vector<1x128xf32>
    %17 = vector.broadcast %16 : vector<1x128xf32> to vector<128x128xf32>
    %18 = arith.addf %15, %17 : vector<128x128xf32>
    %cst_15 = arith.constant dense<0xFF800000> : vector<128xf32>
    %19 = vector.multi_reduction <maximumf>, %18, %cst_15 [1] : vector<128x128xf32> to vector<128xf32>
    %20 = vector.shape_cast %19 : vector<128xf32> to vector<128x1xf32>
    %21 = vector.broadcast %20 : vector<128x1xf32> to vector<128x128xf32>
    %22 = arith.subf %18, %21 : vector<128x128xf32>
    %23 = math.exp %22 : vector<128x128xf32>
    %cst_16 = arith.constant dense<0.000000e+00> : vector<128xf32>
    %24 = vector.multi_reduction <add>, %23, %cst_16 [1] : vector<128x128xf32> to vector<128xf32>
    %25 = vector.shape_cast %24 : vector<128xf32> to vector<128x1xf32>
    %26 = math.log %25 : vector<128x1xf32>
    %27 = vector.broadcast %26 : vector<128x1xf32> to vector<128x128xf32>
    %28 = arith.subf %22, %27 : vector<128x128xf32>
    %c0_17 = arith.constant 0 : index
    %c0_18 = arith.constant 0 : index
    %29 = vector.load %arg7[%c0_17, %c0_18] : memref<128x128xf32, #tpu.memory_space<vmem>>, vector<128x128xf32>
    tpu.vector_store %arg7[%c0_17, %c0_18], %28 {strides = array<i32>} : memref<128x128xf32, #tpu.memory_space<vmem>>, vector<128x128xf32>,
    return
  }
  func.func @transform_0(%arg0: i32) -> (i32, i32) {
    %c0_i32 = arith.constant 0 : i32
    %c0_i32_0 = arith.constant 0 : i32
    %c0_i32_1 = arith.constant 0 : i32
    return %c0_i32, %c0_i32_0 : i32, i32
  }
  func.func @transform_1(%arg0: i32) -> (i32, i32) {
    %c0_i32 = arith.constant 0 : i32
    %c0_i32_0 = arith.constant 0 : i32
    %c0_i32_1 = arith.constant 0 : i32
    return %c0_i32, %c0_i32_0 : i32, i32
  }
  func.func @transform_2(%arg0: i32) -> (i32, i32) {
    %c0_i32 = arith.constant 0 : i32
    %c0_i32_0 = arith.constant 0 : i32
    %c0_i32_1 = arith.constant 0 : i32
    return %c0_i32, %c0_i32_0 : i32, i32
  }
  func.func @transform_3(%arg0: i32) -> (i32, i32) {
    %c0_i32 = arith.constant 0 : i32
    %c0_i32_0 = arith.constant 0 : i32
    %c0_i32_1 = arith.constant 0 : i32
    return %c0_i32, %c0_i32_0 : i32, i32
  }
  func.func @transform_4(%arg0: i32) -> (i32, i32) {
    %c0_i32 = arith.constant 0 : i32
    %c0_i32_0 = arith.constant 0 : i32
    %c0_i32_1 = arith.constant 0 : i32
    return %c0_i32, %c0_i32_0 : i32, i32
  }
  func.func @transform_5(%arg0: i32) -> (i32, i32) {
    %c0_i32 = arith.constant 0 : i32
    %c0_i32_0 = arith.constant 0 : i32
    %c0_i32_1 = arith.constant 0 : i32
    return %c0_i32, %c0_i32_0 : i32, i32
  }
  func.func @transform_6(%arg0: i32) -> (i32, i32) {
    %c0_i32 = arith.constant 0 : i32
    %c0_i32_0 = arith.constant 0 : i32
    %c0_i32_1 = arith.constant 0 : i32
    return %c0_i32, %c0_i32_0 : i32, i32
  }
}

</mosaic_0001>

<bundles_post_ra>
// kernel: gcn_forward.1
= control target key start
LH: loop header
LB: loop body
LE: loop exit
PB: predicated region body
PF: predicated region fallthrough
CT: control target
= control target key end

     0   :  { %vm128_vm0 = vcmask 523264   ;;  %vm442_vm1 = vcmask 130048   ;;  %s1431_s2 = inlined_call_operand.vmem [shape: bf16[64,16], index: 2, kind: input, shape index: {}]   ;;  %s1432_s1 = inlined_call_operand.vmem [shape: bf16[128,64], index: 1, kind: input, shape index: {}]   ;;  %s1433_s0 = inlined_call_operand.vmem [shape: bf16[128,128], index: 0, kind: input, shape index: {}]   ;;  %s1434_s4 = inlined_call_operand.vmem [shape: bf16[16,128], index: 4, kind: input, shape index: {}]   ;;  %s1435_s3 = inlined_call_operand.vmem [shape: f32[1,16], index: 3, kind: input, shape index: {}]   ;;  %s1436_s5 = inlined_call_operand.vmem [shape: f32[1,128], index: 5, kind: input, shape index: {}]   ;;  %s1437_s6 = inlined_call_operand.vmem [shape: f32[128,128], index: 6, kind: output, shape index: {}]  }
   0x1   :  { %v1070_v0 = vld [vmem:[%s1431_s2] sm:$0xff]   ;;  %v1071_v1 = vld [vmem:[%s1431_s2 + $0x8] sm:$0xff]   ;;  %v1072_v2 = vld [vmem:[%s1431_s2 + $0x10] sm:$0xff]  }
   0x2   :  { %948 = vmatprep.subr.bf16.mxu0 %v1070_v0  ;;  %v1074_v3 = vld [vmem:[%s1432_s1] sm:$0xff]   ;;  %v1073_v4 = vld [vmem:[%s1431_s2 + $0x18] sm:$0xff]   ;;  %v1075_v5 = vld [vmem:[%s1432_s1 + $0x8] sm:$0xff]  }
   0x3   :  { %949 = vmatpush3.bf16.msra.mxu0 %v1070_v0  ;;  %956 = vmatprep.mubr.msk.bf16.mxu0 %vm128_vm0, %v1074_v3  ;;  %v1076_v6 = vld [vmem:[%s1432_s1 + $0x10] sm:$0xff]   ;;  %v1077_v7 = vld [vmem:[%s1432_s1 + $0x18] sm:$0xff]   ;;  %v1078_v8 = vld [vmem:[%s1432_s1 + $0x20] sm:$0xff]  }
   0x4   :  { %950 = vmatprep.subr.bf16.mxu0 %v1071_v1  ;;  %v1079_v9 = vld [vmem:[%s1432_s1 + $0x28] sm:$0xff]   ;;  %v1080_v10 = vld [vmem:[%s1432_s1 + $0x30] sm:$0xff]   ;;  %v1081_v11 = vld [vmem:[%s1432_s1 + $0x38] sm:$0xff]  }
   0x5   :  { %v1237_v12 = vld [vmem:[%s1433_s0] sm:$0xff]   ;;  %v1246_v38 = vld [vmem:[%s1433_s0 + $0x8] sm:$0xff]   ;;  %v1084_v39 = vld [vmem:[%s1433_s0 + $0x10] sm:$0xff]  }
   0x6   :  { %988 = vmatprep.mubr.bf16.mxu1 %v1237_v12  ;;  %v1090_v13 = vld [vmem:[%s1434_s4] sm:$0xff]   ;;  %v1255_v40 = vld [vmem:[%s1433_s0 + $0x18] sm:$0xff]   ;;  %v1267_v42 = vld [vmem:[%s1433_s0 + $0x28] sm:$0xff]  }
   0x7   :  { %951 = vmatpush3.bf16.msra.mxu0 %v1071_v1  ;;  %v1260_v41 = vld [vmem:[%s1433_s0 + $0x20] sm:$0xff]   ;;  %v1272_v43 = vld [vmem:[%s1433_s0 + $0x30] sm:$0xff]   ;;  %v1279_v44 = vld [vmem:[%s1433_s0 + $0x38] sm:$0xff]  }
   0x8   :  { %952 = vmatprep.subr.bf16.mxu0 %v1072_v2  ;;  %v876_v45 = vld [vmem:[%s1435_s3] ss:$0 sm:$0xff] }
   0xb   :  { %953 = vmatpush3.bf16.msra.mxu0 %v1072_v2 }
   0xc   :  { %954 = vmatprep.subr.bf16.mxu0 %v1073_v4 }
   0xf   :  { %955 = vmatpush3.bf16.msra.mxu0 %v1073_v4 }
  0x10   :  { %1004 = vmatprep.subr.bf16.mxu0 %v1090_v13 }
  0x12   :  { %957 = vmatmul.mubr.msk.bf16.vlgmr.msra.gmra.mrb[0].mxu0 %vm128_vm0, %v1075_v5 }
  0x13   :  { %960 = vmatprep.mubr.msk.bf16.mxu0 %vm128_vm0, %v1076_v6  ;;  %1005 = vmatpush3.bf16.msra.mxu0 %v1090_v13 }
  0x1a   :  { %961 = vmatmul.mubr.msk.bf16.gmra.mrb[4].mxu0 %vm128_vm0, %v1077_v7 }
  0x1b   :  { %964 = vmatprep.mubr.msk.bf16.mxu0 %vm128_vm0, %v1078_v8 }
  0x22   :  { %965 = vmatmul.mubr.msk.bf16.gmra.mrb[8].mxu0 %vm128_vm0, %v1079_v9 }
  0x23   :  { %968 = vmatprep.mubr.msk.bf16.mxu0 %vm128_vm0, %v1080_v10 }
  0x2a   :  { %969 = vmatmul.mubr.msk.bf16.gmra.mrb[12].mxu0 %vm128_vm0, %v1081_v11 }
  0xe5   :  { %v958_v14 = vpop.f32.mrb[0].mxu0 }
  0xe6   :  { %v187_v15 = vpop.f32.mrb[1].mxu0 }
  0xe7   :  { %v959_v16 = vpop.f32.mrb[2].mxu0 }
  0xe8   :  { %v251_v17 = vpack.c.bf16 %v959_v16, %v958_v14  ;;  %v190_v18 = vpop.f32.mrb[3].mxu0 }
  0xe9   :  { %v250_v19 = vpack.c.bf16 %v190_v18, %v187_v15 }
  0xeb   :  { %972 = vmatprep.subr.bf16.mxu1 %v250_v19 }
  0xec   :  { %973 = vmatpush3.bf16.msra.mxu1 %v250_v19 }
  0xed   :  { %v962_v20 = vpop.f32.mrb[4].mxu0  ;;  %974 = vmatprep.subr.bf16.mxu1 %v251_v17 }
  0xee   :  { %v203_v21 = vpop.f32.mrb[5].mxu0 }
  0xef   :  { %v963_v22 = vpop.f32.mrb[6].mxu0 }
  0xf0   :  { %v253_v23 = vpack.c.bf16 %v963_v22, %v962_v20  ;;  %v206_v24 = vpop.f32.mrb[7].mxu0  ;;  %975 = vmatpush3.bf16.msra.mxu1 %v251_v17 }
  0xf1   :  { %v252_v25 = vpack.c.bf16 %v206_v24, %v203_v21 }
  0xf3   :  { %976 = vmatprep.subr.bf16.mxu1 %v252_v25 }
  0xf4   :  { %977 = vmatpush3.bf16.msra.mxu1 %v252_v25 }
  0xf5   :  { %v966_v26 = vpop.f32.mrb[8].mxu0  ;;  %978 = vmatprep.subr.bf16.mxu1 %v253_v23 }
  0xf6   :  { %v219_v27 = vpop.f32.mrb[9].mxu0 }
  0xf7   :  { %v967_v28 = vpop.f32.mrb[10].mxu0 }
  0xf8   :  { %v255_v29 = vpack.c.bf16 %v967_v28, %v966_v26  ;;  %v222_v30 = vpop.f32.mrb[11].mxu0  ;;  %979 = vmatpush3.bf16.msra.mxu1 %v253_v23 }
  0xf9   :  { %v254_v31 = vpack.c.bf16 %v222_v30, %v219_v27 }
  0xfb   :  { %980 = vmatprep.subr.bf16.mxu1 %v254_v31 }
  0xfc   :  { %981 = vmatpush3.bf16.msra.mxu1 %v254_v31 }
  0xfd   :  { %v970_v32 = vpop.f32.mrb[12].mxu0  ;;  %982 = vmatprep.subr.bf16.mxu1 %v255_v29 }
  0xfe   :  { %v235_v33 = vpop.f32.mrb[13].mxu0 }
  0xff   :  { %v971_v34 = vpop.f32.mrb[14].mxu0 }
 0x100   :  { %v257_v35 = vpack.c.bf16 %v971_v34, %v970_v32  ;;  %v238_v36 = vpop.f32.mrb[15].mxu0  ;;  %983 = vmatpush3.bf16.msra.mxu1 %v255_v29 }
 0x101   :  { %v256_v37 = vpack.c.bf16 %v238_v36, %v235_v33 }
 0x103   :  { %984 = vmatprep.subr.bf16.mxu1 %v256_v37 }
 0x104   :  { %985 = vmatpush3.bf16.msra.mxu1 %v256_v37 }
 0x105   :  { %986 = vmatprep.subr.bf16.mxu1 %v257_v35 }
 0x108   :  { %987 = vmatpush3.bf16.msra.mxu1 %v257_v35 }
 0x10b   :  { %989 = vmatmul.mubr.bf16.vlgmr.msra.gmra.mrb[0].mxu1 %v1246_v38 }
 0x10c   :  { %992 = vmatprep.mubr.bf16.mxu1 %v1084_v39 }
 0x113   :  { %993 = vmatmul.mubr.bf16.gmra.mrb[4].mxu1 %v1255_v40 }
 0x114   :  { %996 = vmatprep.mubr.bf16.mxu1 %v1260_v41 }
 0x11b   :  { %997 = vmatmul.mubr.bf16.gmra.mrb[8].mxu1 %v1267_v42 }
 0x11c   :  { %1000 = vmatprep.mubr.bf16.mxu1 %v1272_v43 }
 0x123   :  { %1001 = vmatmul.mubr.bf16.gmra.mrb[12].mxu1 %v1279_v44 }
 0x124   :  { %1042 = vmatprep.mubr.bf16.mxu1 %v1084_v39 }
 0x1de   :  { %v990_v46 = vpop.f32.mrb[0].mxu1 }
 0x1df   :  { %v356_v47 = vadd.f32 %v990_v46, %v876_v45  ;;  %v347_v48 = vpop.f32.mrb[1].mxu1 }
 0x1e0   :  { %v348_v49 = vadd.f32 %v876_v45, %v347_v48  ;;  %v991_v50 = vpop.f32.mrb[2].mxu1 }
 0x1e1   :  { %v359_v51 = vadd.f32 %v991_v50, %v876_v45  ;;  %v350_v52 = vpop.f32.mrb[3].mxu1  ;;  %v412_v54 = vmax.f32 %v356_v47, 0.0 }
 0x1e2   :  { %v351_v53 = vadd.f32 %v876_v45, %v350_v52  ;;  %v410_v56 = vmax.f32 %v348_v49, 0.0 }
 0x1e3   :  { %v413_v55 = vmax.f32 %v359_v51, 0.0 }
 0x1e4   :  { %v411_v57 = vmax.f32 %v351_v53, 0.0 }
 0x1e5   :  { %v427_v58 = vpack.c.bf16 %v413_v55, %v412_v54 }
 0x1e6   :  { %v426_v59 = vpack.c.bf16 %v411_v57, %v410_v56  ;;  %v994_v60 = vpop.f32.mrb[4].mxu1 }
 0x1e7   :  { %v372_v61 = vadd.f32 %v994_v60, %v876_v45  ;;  %v363_v62 = vpop.f32.mrb[5].mxu1 }
 0x1e8   :  { %v364_v63 = vadd.f32 %v876_v45, %v363_v62  ;;  %v995_v0 = vpop.f32.mrb[6].mxu1  ;;  %1006 = vmatprep.mubr.msk.bf16.mxu0 %vm442_vm1, %v426_v59 }
 0x1e9   :  { %v375_v1 = vadd.f32 %v995_v0, %v876_v45  ;;  %v366_v2 = vpop.f32.mrb[7].mxu1  ;;  %1007 = vmatmul.mubr.msk.bf16.vlgmr.msra.gmra.mrb[16].mxu0 %vm442_vm1, %v427_v58  ;;  %v416_v4 = vmax.f32 %v372_v61, 0.0 }
 0x1ea   :  { %v367_v3 = vadd.f32 %v876_v45, %v366_v2  ;;  %v414_v6 = vmax.f32 %v364_v63, 0.0 }
 0x1eb   :  { %v417_v5 = vmax.f32 %v375_v1, 0.0 }
 0x1ec   :  { %v415_v7 = vmax.f32 %v367_v3, 0.0 }
 0x1ed   :  { %v429_v8 = vpack.c.bf16 %v417_v5, %v416_v4  ;;  %v894_v4 = vld [vmem:[%s1436_s5] ss:$0 sm:$0xff] }
 0x1ee   :  { %v428_v9 = vpack.c.bf16 %v415_v7, %v414_v6  ;;  %v998_v10 = vpop.f32.mrb[8].mxu1 }
 0x1ef   :  { %v388_v11 = vadd.f32 %v998_v10, %v876_v45  ;;  %v379_v13 = vpop.f32.mrb[9].mxu1 }
 0x1f0   :  { %v380_v14 = vadd.f32 %v876_v45, %v379_v13  ;;  %v999_v15 = vpop.f32.mrb[10].mxu1  ;;  %1010 = vmatprep.mubr.msk.bf16.mxu0 %vm442_vm1, %v428_v9 }
 0x1f1   :  { %v391_v16 = vadd.f32 %v999_v15, %v876_v45  ;;  %v382_v17 = vpop.f32.mrb[11].mxu1  ;;  %1011 = vmatmul.mubr.msk.bf16.gmra.mrb[20].mxu0 %vm442_vm1, %v429_v8  ;;  %v420_v19 = vmax.f32 %v388_v11, 0.0 }
 0x1f2   :  { %v383_v18 = vadd.f32 %v876_v45, %v382_v17  ;;  %v418_v21 = vmax.f32 %v380_v14, 0.0 }
 0x1f3   :  { %v421_v20 = vmax.f32 %v391_v16, 0.0 }
 0x1f4   :  { %v419_v22 = vmax.f32 %v383_v18, 0.0 }
 0x1f5   :  { %v431_v23 = vpack.c.bf16 %v421_v20, %v420_v19 }
 0x1f6   :  { %v430_v24 = vpack.c.bf16 %v419_v22, %v418_v21  ;;  %v1002_v25 = vpop.f32.mrb[12].mxu1 }
 0x1f7   :  { %v404_v26 = vadd.f32 %v1002_v25, %v876_v45  ;;  %v395_v27 = vpop.f32.mrb[13].mxu1 }
 0x1f8   :  { %v396_v28 = vadd.f32 %v876_v45, %v395_v27  ;;  %v1003_v29 = vpop.f32.mrb[14].mxu1  ;;  %1014 = vmatprep.mubr.msk.bf16.mxu0 %vm442_vm1, %v430_v24 }
 0x1f9   :  { %v407_v30 = vadd.f32 %v1003_v29, %v876_v45  ;;  %v398_v31 = vpop.f32.mrb[15].mxu1  ;;  %1015 = vmatmul.mubr.msk.bf16.gmra.mrb[24].mxu0 %vm442_vm1, %v431_v23  ;;  %v424_v33 = vmax.f32 %v404_v26, 0.0 }
 0x1fa   :  { %v399_v32 = vadd.f32 %v876_v45, %v398_v31  ;;  %v422_v35 = vmax.f32 %v396_v28, 0.0 }
 0x1fb   :  { %v425_v34 = vmax.f32 %v407_v30, 0.0 }
 0x1fc   :  { %v423_v36 = vmax.f32 %v399_v32, 0.0 }
 0x1fd   :  { %v433_v37 = vpack.c.bf16 %v425_v34, %v424_v33 }
 0x1fe   :  { %v432_v39 = vpack.c.bf16 %v423_v36, %v422_v35 }
 0x200   :  { %1018 = vmatprep.mubr.msk.bf16.mxu0 %vm442_vm1, %v432_v39 }
 0x201   :  { %1019 = vmatmul.mubr.msk.bf16.gmra.mrb[28].mxu0 %vm442_vm1, %v433_v37 }
 0x202   :  { %1038 = vmatprep.mubr.bf16.mxu0 %v1237_v12 }
 0x2bc   :  { %v1008_v46 = vpop.f32.mrb[16].mxu0 }
 0x2bd   :  { %v501_v47 = vpop.f32.mrb[17].mxu0 }
 0x2be   :  { %v1009_v48 = vpop.f32.mrb[18].mxu0 }
 0x2bf   :  { %v565_v49 = vpack.c.bf16 %v1009_v48, %v1008_v46  ;;  %v504_v50 = vpop.f32.mrb[19].mxu0 }
 0x2c0   :  { %v564_v51 = vpack.c.bf16 %v504_v50, %v501_v47 }
 0x2c2   :  { %1022 = vmatprep.subr.bf16.mxu0 %v564_v51  ;;  %1054 = vmatprep.subr.bf16.mxu1 %v564_v51 }
 0x2c3   :  { %1023 = vmatpush3.bf16.msra.mxu0 %v564_v51  ;;  %1062 = vmatpush3.bf16.msra.mxu1 %v564_v51 }
 0x2c4   :  { %v1012_v45 = vpop.f32.mrb[20].mxu0  ;;  %1024 = vmatprep.subr.bf16.mxu0 %v565_v49  ;;  %1055 = vmatprep.subr.bf16.mxu1 %v565_v49 }
 0x2c5   :  { %v517_v52 = vpop.f32.mrb[21].mxu0 }
 0x2c6   :  { %v1013_v53 = vpop.f32.mrb[22].mxu0 }
 0x2c7   :  { %v567_v54 = vpack.c.bf16 %v1013_v53, %v1012_v45  ;;  %v520_v55 = vpop.f32.mrb[23].mxu0  ;;  %1025 = vmatpush3.bf16.msra.mxu0 %v565_v49  ;;  %1063 = vmatpush3.bf16.msra.mxu1 %v565_v49 }
 0x2c8   :  { %v566_v12 = vpack.c.bf16 %v520_v55, %v517_v52 }
 0x2ca   :  { %1026 = vmatprep.subr.bf16.mxu0 %v566_v12  ;;  %1056 = vmatprep.subr.bf16.mxu1 %v566_v12 }
 0x2cb   :  { %1027 = vmatpush3.bf16.msra.mxu0 %v566_v12  ;;  %1064 = vmatpush3.bf16.msra.mxu1 %v566_v12 }
 0x2cc   :  { %v1016_v56 = vpop.f32.mrb[24].mxu0  ;;  %1028 = vmatprep.subr.bf16.mxu0 %v567_v54  ;;  %1057 = vmatprep.subr.bf16.mxu1 %v567_v54 }
 0x2cd   :  { %v533_v57 = vpop.f32.mrb[25].mxu0 }
 0x2ce   :  { %v1017_v58 = vpop.f32.mrb[26].mxu0 }
 0x2cf   :  { %v569_v59 = vpack.c.bf16 %v1017_v58, %v1016_v56  ;;  %v536_v60 = vpop.f32.mrb[27].mxu0  ;;  %1029 = vmatpush3.bf16.msra.mxu0 %v567_v54  ;;  %1065 = vmatpush3.bf16.msra.mxu1 %v567_v54 }
 0x2d0   :  { %v568_v61 = vpack.c.bf16 %v536_v60, %v533_v57 }
 0x2d2   :  { %1030 = vmatprep.subr.bf16.mxu0 %v568_v61  ;;  %1058 = vmatprep.subr.bf16.mxu1 %v568_v61 }
 0x2d3   :  { %1031 = vmatpush3.bf16.msra.mxu0 %v568_v61  ;;  %1066 = vmatpush3.bf16.msra.mxu1 %v568_v61 }
 0x2d4   :  { %v1020_v62 = vpop.f32.mrb[28].mxu0  ;;  %1032 = vmatprep.subr.bf16.mxu0 %v569_v59  ;;  %1059 = vmatprep.subr.bf16.mxu1 %v569_v59 }
 0x2d5   :  { %v549_v63 = vpop.f32.mrb[29].mxu0 }
 0x2d6   :  { %v1021_v0 = vpop.f32.mrb[30].mxu0 }
 0x2d7   :  { %v571_v1 = vpack.c.bf16 %v1021_v0, %v1020_v62  ;;  %v552_v2 = vpop.f32.mrb[31].mxu0  ;;  %1033 = vmatpush3.bf16.msra.mxu0 %v569_v59  ;;  %1067 = vmatpush3.bf16.msra.mxu1 %v569_v59 }
 0x2d8   :  { %v570_v3 = vpack.c.bf16 %v552_v2, %v549_v63 }
 0x2da   :  { %1034 = vmatprep.subr.bf16.mxu0 %v570_v3  ;;  %1060 = vmatprep.subr.bf16.mxu1 %v570_v3 }
 0x2db   :  { %1035 = vmatpush3.bf16.msra.mxu0 %v570_v3  ;;  %1068 = vmatpush3.bf16.msra.mxu1 %v570_v3 }
 0x2dc   :  { %1036 = vmatprep.subr.bf16.mxu0 %v571_v1  ;;  %1061 = vmatprep.subr.bf16.mxu1 %v571_v1 }
 0x2df   :  { %1037 = vmatpush3.bf16.msra.mxu0 %v571_v1  ;;  %1069 = vmatpush3.bf16.msra.mxu1 %v571_v1 }
 0x2e2   :  { %1039 = vmatmul.mubr.bf16.vlgmr.msra.gmra.mrb[32].mxu0 %v1246_v38  ;;  %1043 = vmatmul.mubr.bf16.vlgmr.msra.gmra.mrb[16].mxu1 %v1255_v40 }
 0x2e3   :  { %1046 = vmatprep.mubr.bf16.mxu1 %v1260_v41 }
 0x2ea   :  { %1047 = vmatmul.mubr.bf16.gmra.mrb[20].mxu1 %v1267_v42 }
 0x2eb   :  { %1050 = vmatprep.mubr.bf16.mxu1 %v1272_v43 }
 0x2f2   :  { %1051 = vmatmul.mubr.bf16.gmra.mrb[24].mxu1 %v1279_v44 }
 0x3b5   :  { %v1040_v5 = vpop.f32.mrb[32].mxu0  ;;  %v1044_v6 = vpop.f32.mrb[16].mxu1 }
 0x3b6   :  { %v622_v7 = vadd.f32 %v1040_v5, %v894_v4  ;;  %v638_v8 = vadd.f32 %v1044_v6, %v894_v4  ;;  %v613_v9 = vpop.f32.mrb[33].mxu0  ;;  %v629_v38 = vpop.f32.mrb[17].mxu1 }
 0x3b7   :  { %v1041_v10 = vpop.f32.mrb[34].mxu0  ;;  %v1045_v40 = vpop.f32.mrb[18].mxu1  ;;  %v614_v11 = vadd.f32 %v894_v4, %v613_v9  ;;  %v630_v13 = vadd.f32 %v894_v4, %v629_v38 }
 0x3b8   :  { %688 = vmax.xlane.f32.xlu0 %v638_v8  ;;  %v632_v41 = vpop.f32.mrb[19].mxu1  ;;  %680 = vmax.xlane.f32.xlu1 %v622_v7  ;;  %v616_v42 = vpop.f32.mrb[35].mxu0  ;;  %v625_v43 = vadd.f32 %v1041_v10, %v894_v4  ;;  %v641_v14 = vadd.f32 %v1045_v40, %v894_v4 }
 0x3b9   :  { %v633_v18 = vadd.f32 %v894_v4, %v632_v41  ;;  %v617_v19 = vadd.f32 %v894_v4, %v616_v42 }
 0x3bc   :  { %682 = vmax.xlane.f32.xlu1 %v625_v43  ;;  %676 = vmax.xlane.f32.xlu0 %v614_v11 }
 0x3bd   :  { %v1048_v44 = vpop.f32.mrb[20].mxu1 }
 0x3be   :  { %v645_v15 = vpop.f32.mrb[21].mxu1  ;;  %v654_v20 = vadd.f32 %v1048_v44, %v894_v4 }
 0x3bf   :  { %v1049_v16 = vpop.f32.mrb[22].mxu1  ;;  %v646_v26 = vadd.f32 %v894_v4, %v645_v15 }
 0x3c0   :  { %690 = vmax.xlane.f32.xlu1 %v641_v14  ;;  %684 = vmax.xlane.f32.xlu0 %v630_v13  ;;  %v648_v17 = vpop.f32.mrb[23].mxu1  ;;  %v657_v21 = vadd.f32 %v1049_v16, %v894_v4 }
 0x3c1   :  { %v649_v27 = vadd.f32 %v894_v4, %v648_v17 }
 0x3c4   :  { %686 = vmax.xlane.f32.xlu1 %v633_v18  ;;  %678 = vmax.xlane.f32.xlu0 %v617_v19 }
 0x3c5   :  { %v1052_v22 = vpop.f32.mrb[24].mxu1 }
 0x3c6   :  { %v661_v23 = vpop.f32.mrb[25].mxu1  ;;  %v1309_v30 = vadd.f32 %v1052_v22, %v894_v4 }
 0x3c7   :  { %v1053_v24 = vpop.f32.mrb[26].mxu1  ;;  %v1303_v28 = vadd.f32 %v894_v4, %v661_v23 }
 0x3c8   :  { %698 = vmax.xlane.f32.xlu1 %v657_v21  ;;  %696 = vmax.xlane.f32.xlu0 %v654_v20  ;;  %v664_v25 = vpop.f32.mrb[27].mxu1  ;;  %v1311_v31 = vadd.f32 %v1053_v24, %v894_v4 }
 0x3c9   :  { %v1305_v29 = vadd.f32 %v894_v4, %v664_v25 }
 0x3cc   :  { %694 = vmax.xlane.f32.xlu1 %v649_v27  ;;  %692 = vmax.xlane.f32.xlu0 %v646_v26 }
 0x3d0   :  { %702 = vmax.xlane.f32.xlu1 %v1305_v29  ;;  %700 = vmax.xlane.f32.xlu0 %v1303_v28 }
 0x3d4   :  { %706 = vmax.xlane.f32.xlu1 %v1311_v31  ;;  %704 = vmax.xlane.f32.xlu0 %v1309_v30 }
 0x445   :  { %v689_v32 = vpop.xlane.xlu0 %688  ;;  %v681_v33 = vpop.xlane.xlu1 %680 }
 0x446   :  { %v1315_v34 = vsub.f32 %v622_v7, %v681_v33  ;;  %v1317_v35 = vsub.f32 %v638_v8, %v689_v32 }
 0x448   :  { %v728_v36 = vmul.f32 1.442695, %v1315_v34  ;;  %v736_v47 = vmul.f32 1.442695, %v1317_v35 }
 0x449   :  { %v683_v37 = vpop.xlane.xlu1 %682  ;;  %v677_v39 = vpop.xlane.xlu0 %676 }
 0x44a   :  { %v1320_v46 = vsub.f32 %v625_v43, %v683_v37  ;;  %1091 = vpow2.f32 %v728_v36  ;;  %v1323_v48 = vsub.f32 %v614_v11, %v677_v39 }
 0x44c   :  { %v730_v49 = vmul.f32 1.442695, %v1320_v46  ;;  %v724_v53 = vmul.f32 1.442695, %v1323_v48 }
 0x44d   :  { %v691_v50 = vpop.xlane.xlu1 %690  ;;  %v685_v51 = vpop.xlane.xlu0 %684 }
 0x44e   :  { %1093 = vpow2.f32 %v730_v49  ;;  %v1326_v45 = vsub.f32 %v641_v14, %v691_v50  ;;  %v1328_v52 = vsub.f32 %v630_v13, %v685_v51 }
 0x44f   :  { %1095 = vpow2.f32 %v736_v47 }
 0x450   :  { %v738_v54 = vmul.f32 1.442695, %v1326_v45  ;;  %v732_v56 = vmul.f32 1.442695, %v1328_v52 }
 0x451   :  { %v687_v55 = vpop.xlane.xlu1 %686  ;;  %v679_v12 = vpop.xlane.xlu0 %678 }
 0x452   :  { %1097 = vpow2.f32 %v738_v54  ;;  %v1333_v57 = vsub.f32 %v633_v18, %v687_v55  ;;  %v1335_v58 = vsub.f32 %v617_v19, %v679_v12 }
 0x453   :  { %1099 = vpow2.f32 %v724_v53 }
 0x454   :  { %v726_v59 = vmul.f32 1.442695, %v1335_v58  ;;  %v1092_v60 = vpop.eup %1091  ;;  %1101 = vpow2.f32 %v732_v56  ;;  %v734_v63 = vmul.f32 1.442695, %v1333_v57 }
 0x455   :  { %v699_v61 = vpop.xlane.xlu1 %698  ;;  %v697_v62 = vpop.xlane.xlu0 %696  ;;  %760 = vadd.xlane.f32.xlu0 %v1092_v60 }
 0x456   :  { %v1339_v0 = vsub.f32 %v657_v21, %v699_v61  ;;  %v1341_v1 = vsub.f32 %v654_v20, %v697_v62  ;;  %1103 = vpow2.f32 %v726_v59 }
 0x457   :  { %1105 = vpow2.f32 %v734_v63 }
 0x458   :  { %v1094_v2 = vpop.eup %1093  ;;  %v744_v3 = vmul.f32 1.442695, %v1341_v1  ;;  %v746_v7 = vmul.f32 1.442695, %v1339_v0 }
 0x459   :  { %v1096_v4 = vpop.eup %1095  ;;  %762 = vadd.xlane.f32.xlu1 %v1094_v2  ;;  %v695_v5 = vpop.xlane.xlu1 %694 }
 0x45a   :  { %v693_v6 = vpop.xlane.xlu0 %692  ;;  %v1345_v8 = vsub.f32 %v649_v27, %v695_v5  ;;  %768 = vadd.xlane.f32.xlu0 %v1096_v4  ;;  %1107 = vpow2.f32 %v744_v3 }
 0x45b   :  { %v1347_v9 = vsub.f32 %v646_v26, %v693_v6  ;;  %1109 = vpow2.f32 %v746_v7 }
 0x45c   :  { %v1098_v38 = vpop.eup %1097  ;;  %v742_v11 = vmul.f32 1.442695, %v1345_v8 }
 0x45d   :  { %v740_v10 = vmul.f32 1.442695, %v1347_v9  ;;  %v1100_v40 = vpop.eup %1099  ;;  %770 = vadd.xlane.f32.xlu1 %v1098_v38  ;;  %v703_v41 = vpop.xlane.xlu1 %702 }
 0x45e   :  { %v701_v42 = vpop.xlane.xlu0 %700  ;;  %v1352_v43 = vsub.f32 %v1305_v29, %v703_v41  ;;  %756 = vadd.xlane.f32.xlu0 %v1100_v40  ;;  %v1102_v13 = vpop.eup %1101 }
 0x45f   :  { %v1355_v44 = vsub.f32 %v1303_v28, %v701_v42  ;;  %1111 = vpow2.f32 %v740_v10 }
 0x460   :  { %v1104_v15 = vpop.eup %1103  ;;  %1113 = vpow2.f32 %v742_v11  ;;  %v750_v18 = vmul.f32 1.442695, %v1352_v43 }
 0x461   :  { %v748_v14 = vmul.f32 1.442695, %v1355_v44  ;;  %v707_v16 = vpop.xlane.xlu1 %706  ;;  %758 = vadd.xlane.f32.xlu1 %v1104_v15  ;;  %v1106_v21 = vpop.eup %1105 }
 0x462   :  { %v705_v17 = vpop.xlane.xlu0 %704  ;;  %764 = vadd.xlane.f32.xlu0 %v1102_v13  ;;  %v1363_v20 = vsub.f32 %v1311_v31, %v707_v16 }
 0x463   :  { %v1360_v19 = vsub.f32 %v1309_v30, %v705_v17  ;;  %1115 = vpow2.f32 %v748_v14 }
 0x464   :  { %v1108_v23 = vpop.eup %1107  ;;  %1117 = vpow2.f32 %v750_v18  ;;  %v754_v24 = vmul.f32 1.442695, %v1363_v20 }
 0x465   :  { %v752_v22 = vmul.f32 1.442695, %v1360_v19  ;;  %766 = vadd.xlane.f32.xlu1 %v1106_v21  ;;  %v1110_v25 = vpop.eup %1109 }
 0x466   :  { %776 = vadd.xlane.f32.xlu0 %v1108_v23 }
 0x467   :  { %1119 = vpow2.f32 %v752_v22 }
 0x468   :  { %1121 = vpow2.f32 %v754_v24 }
 0x469   :  { %v1112_v26 = vpop.eup %1111  ;;  %778 = vadd.xlane.f32.xlu1 %v1110_v25 }
 0x46a   :  { %772 = vadd.xlane.f32.xlu0 %v1112_v26  ;;  %v1114_v27 = vpop.eup %1113 }
 0x46d   :  { %v1116_v28 = vpop.eup %1115  ;;  %774 = vadd.xlane.f32.xlu1 %v1114_v27 }
 0x46e   :  { %780 = vadd.xlane.f32.xlu0 %v1116_v28  ;;  %v1118_v29 = vpop.eup %1117 }
 0x471   :  { %v1120_v30 = vpop.eup %1119  ;;  %782 = vadd.xlane.f32.xlu1 %v1118_v29 }
 0x472   :  { %784 = vadd.xlane.f32.xlu0 %v1120_v30  ;;  %v1122_v31 = vpop.eup %1121 }
 0x475   :  { %786 = vadd.xlane.f32.xlu1 %v1122_v31 }
 0x4e2   :  { %v761_v32 = vpop.xlane.xlu0 %760 }
 0x4e3   :  { %1123 = vlog2.f32 %v761_v32 }
 0x4e6   :  { %v763_v33 = vpop.xlane.xlu1 %762 }
 0x4e7   :  { %1125 = vlog2.f32 %v763_v33  ;;  %v769_v36 = vpop.xlane.xlu0 %768 }
 0x4e8   :  { %1127 = vlog2.f32 %v769_v36 }
 0x4ea   :  { %v771_v37 = vpop.xlane.xlu1 %770 }
 0x4eb   :  { %1129 = vlog2.f32 %v771_v37  ;;  %v757_v39 = vpop.xlane.xlu0 %756 }
 0x4ec   :  { %1131 = vlog2.f32 %v757_v39 }
 0x4ed   :  { %v1124_v47 = vpop.eup %1123 }
 0x4ee   :  { %v793_v49 = vmul.f32 0.6931472, %v1124_v47  ;;  %v759_v50 = vpop.xlane.xlu1 %758 }
 0x4ef   :  { %v765_v51 = vpop.xlane.xlu0 %764  ;;  %1133 = vlog2.f32 %v759_v50 }
 0x4f0   :  { %v822_v54 = vsub.f32 %v1315_v34, %v793_v49  ;;  %1135 = vlog2.f32 %v765_v51 }
 0x4f1   :  { %v1126_v53 = vpop.eup %1125 }
 0x4f2   :  { %v1128_v55 = vpop.eup %1127  ;;  %v795_v12 = vmul.f32 0.6931472, %v1126_v53  ;;  %838 = vst [vmem:[%s1437_s6 + $0x10] sm:$0xff] %v822_v54  ;;  %v767_v59 = vpop.xlane.xlu1 %766 }
 0x4f3   :  { %v801_v56 = vmul.f32 0.6931472, %v1128_v55  ;;  %v777_v60 = vpop.xlane.xlu0 %776  ;;  %1137 = vlog2.f32 %v767_v59 }
 0x4f4   :  { %v823_v61 = vsub.f32 %v1320_v46, %v795_v12  ;;  %1139 = vlog2.f32 %v777_v60 }
 0x4f5   :  { %v1130_v62 = vpop.eup %1129  ;;  %v826_v63 = vsub.f32 %v1317_v35, %v801_v56 }
 0x4f6   :  { %v1132_v2 = vpop.eup %1131  ;;  %839 = vst [vmem:[%s1437_s6 + $0x18] sm:$0xff] %v823_v61  ;;  %v803_v34 = vmul.f32 0.6931472, %v1130_v62  ;;  %v779_v4 = vpop.xlane.xlu1 %778 }
 0x4f7   :  { %842 = vst [vmem:[%s1437_s6 + $0x30] sm:$0xff] %v826_v63  ;;  %v789_v3 = vmul.f32 0.6931472, %v1132_v2  ;;  %v773_v5 = vpop.xlane.xlu0 %772  ;;  %1141 = vlog2.f32 %v779_v4 }
 0x4f8   :  { %v827_v46 = vsub.f32 %v1326_v45, %v803_v34  ;;  %1143 = vlog2.f32 %v773_v5 }
 0x4f9   :  { %v820_v6 = vsub.f32 %v1323_v48, %v789_v3  ;;  %v1134_v35 = vpop.eup %1133 }
 0x4fa   :  { %843 = vst [vmem:[%s1437_s6 + $0x38] sm:$0xff] %v827_v46  ;;  %v1136_v7 = vpop.eup %1135  ;;  %v791_v38 = vmul.f32 0.6931472, %v1134_v35  ;;  %v775_v10 = vpop.xlane.xlu1 %774 }
 0x4fb   :  { %836 = vst [vmem:[%s1437_s6] sm:$0xff] %v820_v6  ;;  %v781_v40 = vpop.xlane.xlu0 %780  ;;  %v797_v41 = vmul.f32 0.6931472, %v1136_v7  ;;  %1145 = vlog2.f32 %v775_v10 }
 0x4fc   :  { %v821_v45 = vsub.f32 %v1335_v58, %v791_v38  ;;  %1147 = vlog2.f32 %v781_v40 }
 0x4fd   :  { %v1138_v48 = vpop.eup %1137  ;;  %v824_v42 = vsub.f32 %v1328_v52, %v797_v41 }
 0x4fe   :  { %v1140_v11 = vpop.eup %1139  ;;  %837 = vst [vmem:[%s1437_s6 + $0x8] sm:$0xff] %v821_v45  ;;  %v799_v13 = vmul.f32 0.6931472, %v1138_v48  ;;  %v783_v14 = vpop.xlane.xlu1 %782 }
 0x4ff   :  { %v785_v15 = vpop.xlane.xlu0 %784  ;;  %840 = vst [vmem:[%s1437_s6 + $0x20] sm:$0xff] %v824_v42  ;;  %v809_v16 = vmul.f32 0.6931472, %v1140_v11  ;;  %1149 = vlog2.f32 %v783_v14 }
 0x500   :  { %v825_v58 = vsub.f32 %v1333_v57, %v799_v13  ;;  %1151 = vlog2.f32 %v785_v15 }
 0x501   :  { %v1142_v17 = vpop.eup %1141  ;;  %v830_v52 = vsub.f32 %v1341_v1, %v809_v16 }
 0x502   :  { %v1144_v18 = vpop.eup %1143  ;;  %841 = vst [vmem:[%s1437_s6 + $0x28] sm:$0xff] %v825_v58  ;;  %v811_v21 = vmul.f32 0.6931472, %v1142_v17  ;;  %v787_v22 = vpop.xlane.xlu1 %786 }
 0x503   :  { %846 = vst [vmem:[%s1437_s6 + $0x50] sm:$0xff] %v830_v52  ;;  %v805_v23 = vmul.f32 0.6931472, %v1144_v18  ;;  %1153 = vlog2.f32 %v787_v22 }
 0x504   :  { %v831_v24 = vsub.f32 %v1339_v0, %v811_v21 }
 0x505   :  { %v1146_v57 = vpop.eup %1145  ;;  %v828_v25 = vsub.f32 %v1347_v9, %v805_v23 }
 0x506   :  { %v1148_v26 = vpop.eup %1147  ;;  %847 = vst [vmem:[%s1437_s6 + $0x58] sm:$0xff] %v831_v24  ;;  %v807_v1 = vmul.f32 0.6931472, %v1146_v57 }
 0x507   :  { %844 = vst [vmem:[%s1437_s6 + $0x40] sm:$0xff] %v828_v25  ;;  %v813_v27 = vmul.f32 0.6931472, %v1148_v26 }
 0x508   :  { %v829_v28 = vsub.f32 %v1345_v8, %v807_v1 }
 0x509   :  { %v1150_v29 = vpop.eup %1149  ;;  %v832_v30 = vsub.f32 %v1355_v44, %v813_v27 }
 0x50a   :  { %v1152_v0 = vpop.eup %1151  ;;  %845 = vst [vmem:[%s1437_s6 + $0x48] sm:$0xff] %v829_v28  ;;  %v815_v9 = vmul.f32 0.6931472, %v1150_v29 }
 0x50b   :  { %848 = vst [vmem:[%s1437_s6 + $0x60] sm:$0xff] %v832_v30  ;;  %v817_v31 = vmul.f32 0.6931472, %v1152_v0 }
 0x50c   :  { %v833_v32 = vsub.f32 %v1352_v43, %v815_v9 }
 0x50d   :  { %v1154_v33 = vpop.eup %1153  ;;  %v834_v36 = vsub.f32 %v1360_v19, %v817_v31 }
 0x50e   :  { %849 = vst [vmem:[%s1437_s6 + $0x68] sm:$0xff] %v833_v32  ;;  %v819_v8 = vmul.f32 0.6931472, %v1154_v33 }
 0x50f   :  { %850 = vst [vmem:[%s1437_s6 + $0x70] sm:$0xff] %v834_v36 }
 0x510   :  { %v835_v44 = vsub.f32 %v1363_v20, %v819_v8 }
 0x512   :  { %851 = vst [vmem:[%s1437_s6 + $0x78] sm:$0xff] %v835_v44 }

</bundles_post_ra>
